<compile_context>
chip_gen: v7x
topology: tpu7x:2x2x1
jax: 0.10.0
libtpu: 0.0.40
codegen_flags: <defaults>
</compile_context>

<pallas_src>
import functools
import math

import jax
import jax.numpy as jnp
from jax.experimental import pallas as pl
from jax.experimental.pallas import tpu as pltpu

_LANE = 128


def _round_up(n, m):
    return ((n + m - 1) // m) * m


def _pad_to(arr, shape):
    pads = [(0, t - s) for s, t in zip(arr.shape, shape)]
    if any(hi for _, hi in pads):
        return jnp.pad(arr, pads)
    return arr


# Detect once whether single-buffering of grid-invariant operands is available.
try:
    pl.BlockSpec((8, _LANE), lambda i: (0, 0), pipeline_mode=pl.Buffered(1))
    _HAS_SINGLE_BUFFER = True
except Exception:  # older jax: pipeline_mode / Buffered missing
    _HAS_SINGLE_BUFFER = False


def _resident_spec(shape, index_map):
    """BlockSpec for a grid-invariant (resident) operand: 1 VMEM buffer if possible."""
    if _HAS_SINGLE_BUFFER:
        return pl.BlockSpec(shape, index_map, pipeline_mode=pl.Buffered(1))
    return pl.BlockSpec(shape, index_map)


def _usable_vmem_bytes():
    """Physical VMEM minus 1/8 headroom for Mosaic internal scratch / spill."""
    try:
        cap = int(pltpu.get_tpu_info().vmem_capacity_bytes)
    except Exception:
        cap = 64 * 1024 * 1024  # conservative default (v7x per-TC)
    return cap - cap // 8


# ----------------------------------------------------------------------------
# Kernels
# ----------------------------------------------------------------------------
def _mlp_kernel_resident(x_ref, w1_ref, b1_ref, w2_ref, b2_ref, o_ref):
    # Cast x on the VPU in-kernel (free under the MXU-bound bundle) instead of
    # paying a separate cast/copy pass in the wrapper.
    x = x_ref[...].astype(w1_ref.dtype)
    h = jnp.dot(x, w1_ref[...], preferred_element_type=jnp.float32)
    h = jnp.maximum(h + b1_ref[...], 0.0)          # bias + ReLU in f32
    o = jnp.dot(h.astype(w2_ref.dtype), w2_ref[...],
                preferred_element_type=jnp.float32)
    o_ref[...] = (o + b2_ref[...]).astype(o_ref.dtype)


def _mlp_kernel_streamed(x_ref, w1_ref, b1_ref, w2_ref, b2_ref, o_ref, acc_ref):
    # Weight-streaming path: grid axis 1 tiles hid_ch; f32 accumulator in VMEM.
    j = pl.program_id(1)

    @pl.when(j == 0)
    def _():
        acc_ref[...] = jnp.zeros_like(acc_ref)

    x = x_ref[...].astype(w1_ref.dtype)
    h = jnp.dot(x, w1_ref[...], preferred_element_type=jnp.float32)
    h = jnp.maximum(h + b1_ref[...], 0.0)
    acc_ref[...] += jnp.dot(h.astype(w2_ref.dtype), w2_ref[...],
                            preferred_element_type=jnp.float32)

    @pl.when(j == pl.num_programs(1) - 1)
    def _():
        o_ref[...] = (acc_ref[...] + b2_ref[...]).astype(o_ref.dtype)


# ----------------------------------------------------------------------------
# Param preparation (run ONCE, outside the per-call jit path)
# ----------------------------------------------------------------------------
def prepare_mlp_params(w1, b1, w2, b2, compute_dtype=jnp.bfloat16):
    """Cast weights to the MXU compute dtype and zero-pad feature dims to 128.

    w1: (in_ch, hid_ch), w2: (hid_ch, out_ch) -- stored transposed vs torch.
    Biases stay f32 (added to the f32 MXU accumulator inside the kernel).
    Zero padding keeps the math exact; padded columns are sliced off at the end.
    """
    in_ch, hid_ch = w1.shape
    out_ch = w2.shape[1]
    in_p, hid_p, out_p = (_round_up(d, _LANE) for d in (in_ch, hid_ch, out_ch))
    w1p = _pad_to(jnp.asarray(w1, compute_dtype), (in_p, hid_p))
    w2p = _pad_to(jnp.asarray(w2, compute_dtype), (hid_p, out_p))
    b1p = _pad_to(jnp.asarray(b1, jnp.float32).reshape(1, hid_ch), (1, hid_p))
    b2p = _pad_to(jnp.asarray(b2, jnp.float32).reshape(1, out_ch), (1, out_p))
    return w1p, b1p, w2p, b2p


# ----------------------------------------------------------------------------
# Forward
# ----------------------------------------------------------------------------
@functools.partial(jax.jit, static_argnames=("out_ch", "batch_tile", "hid_tile",
                                             "out_dtype", "core_parallel"))
def mlp_forward(x, w1p, b1p, w2p, b2p, *, out_ch=None, batch_tile=1024,
                hid_tile=None, out_dtype=None, core_parallel=False):
    """Fused MLP forward.  x: (B, in_ch); weights from prepare_mlp_params()."""
    B, in_ch = x.shape
    in_p, hid_p = w1p.shape
    out_p = w2p.shape[1]
    out_ch = out_p if out_ch is None else out_ch
    out_dtype = x.dtype if out_dtype is None else out_dtype
    assert in_p >= in_ch and in_p % _LANE == 0, "run prepare_mlp_params() first"

    cbytes = jnp.dtype(w1p.dtype).itemsize
    xbytes = jnp.dtype(x.dtype).itemsize
    obytes = jnp.dtype(out_dtype).itemsize
    sublane = 16 if min(cbytes, xbytes, obytes) < 4 else 8

    usable = _usable_vmem_bytes()

    def _pick_bt(fixed_bytes, per_row_bytes):
        room = max(usable - fixed_bytes, 0)
        max_bt = (room // per_row_bytes) // sublane * sublane
        tile = min(batch_tile, max_bt) if max_bt > 0 else sublane
        tile = max(tile, sublane)
        # choose bt that minimizes batch padding for the given upper bound
        n_steps = max(1, math.ceil(B / tile))
        return _round_up(max(math.ceil(B / n_steps), sublane), sublane)

    # --- resident-weights path sizing (loudly account for Buffered fallback) --
    w_mult = 1 if _HAS_SINGLE_BUFFER else 2
    fixed_res = ((in_p * hid_p + hid_p * out_p) * cbytes
                 + (hid_p + out_p) * 4) * w_mult
    per_row_res = (2 * in_p * xbytes          # x tile (double-buffered)
                   + 2 * out_p * obytes       # out tile (double-buffered)
                   + (hid_p + out_p) * 4)     # f32 intermediates / spill room
    use_resident = fixed_res <= int(0.8 * usable)

    batch_sem = pltpu.CORE_PARALLEL if core_parallel else "parallel"

    if use_resident:
        bt = _pick_bt(fixed_res, per_row_res)
        B_p = _round_up(B, bt)
        footprint = fixed_res + bt * per_row_res

        grid_spec = pltpu.PrefetchScalarGridSpec(
            num_scalar_prefetch=0,
            grid=(B_p // bt,),
            in_specs=[
                # x tile: streamed / double-buffered along the batch grid.
                pl.BlockSpec((bt, in_p), lambda i: (i, 0)),
                # Weights / biases: constant block index -> resident, 1 buffer.
                _resident_spec((in_p, hid_p), lambda i: (0, 0)),
                _resident_spec((1, hid_p), lambda i: (0, 0)),
                _resident_spec((hid_p, out_p), lambda i: (0, 0)),
                _resident_spec((1, out_p), lambda i: (0, 0)),
            ],
            out_specs=pl.BlockSpec((bt, out_p), lambda i: (i, 0)),
        )
        kernel = _mlp_kernel_resident
        dims = (batch_sem,)
    else:
        # Weight-streaming path: tile hid_ch, accumulate fc2 partials in f32.
        th = min(hid_p, 512) if hid_tile is None else hid_tile
        th = max(_LANE, (th // _LANE) * _LANE)
        while hid_p % th:
            th -= _LANE

        def _fixed_st(t):
            return (2 * (in_p * t + t * out_p) * cbytes   # w1/w2 tiles (2x)
                    + 2 * t * 4 + out_p * 4)              # bias tiles

        while th > _LANE and _fixed_st(th) > int(0.6 * usable):
            th -= _LANE
            while hid_p % th:
                th -= _LANE

        fixed_st = _fixed_st(th)
        per_row_st = (2 * in_p * xbytes + 2 * out_p * obytes
                      + out_p * 4            # f32 accumulator scratch
                      + th * 4)              # f32 h intermediate
        bt = _pick_bt(fixed_st, per_row_st)
        B_p = _round_up(B, bt)
        footprint = fixed_st + bt * per_row_st

        grid_spec = pltpu.PrefetchScalarGridSpec(
            num_scalar_prefetch=0,
            grid=(B_p // bt, hid_p // th),
            in_specs=[
                pl.BlockSpec((bt, in_p), lambda i, j: (i, 0)),
                pl.BlockSpec((in_p, th), lambda i, j: (0, j)),
                pl.BlockSpec((1, th), lambda i, j: (0, j)),
                pl.BlockSpec((th, out_p), lambda i, j: (j, 0)),
                _resident_spec((1, out_p), lambda i, j: (0, 0)),
            ],
            out_specs=pl.BlockSpec((bt, out_p), lambda i, j: (i, 0)),
            scratch_shapes=[pltpu.VMEM((bt, out_p), jnp.float32)],
        )
        kernel = _mlp_kernel_streamed
        dims = (batch_sem, "arbitrary")

    vmem_limit = int(min(max(int(1.25 * footprint), 32 * 1024 * 1024), usable))

    flops = 2 * B_p * (in_p * hid_p + hid_p * out_p)
    bytes_accessed = (B_p * in_p * xbytes
                      + (in_p * hid_p + hid_p * out_p) * cbytes
                      + (hid_p + out_p) * 4
                      + B_p * out_p * obytes)
    cost = pl.CostEstimate(flops=flops, transcendentals=0,
                           bytes_accessed=bytes_accessed)

    # Pad only (no cast): the dtype cast happens on the VPU inside the kernel.
    xp = _pad_to(x, (B_p, in_p))

    out_padded = pl.pallas_call(
        kernel,
        out_shape=jax.ShapeDtypeStruct((B_p, out_p), out_dtype),
        grid_spec=grid_spec,
        compiler_params=pltpu.CompilerParams(
            dimension_semantics=dims,
            vmem_limit_bytes=vmem_limit,
        ),
        cost_estimate=cost,
    )(xp, w1p, b1p, w2p, b2p)

    return out_padded[:B, :out_ch]


# ----------------------------------------------------------------------------
# Init (mimics torch.nn.Linear: uniform +/- 1/sqrt(fan_in), weights transposed)
# ----------------------------------------------------------------------------
def init_mlp_params(key, in_ch, hid_ch, out_ch):
    k1, k2, k3, k4 = jax.random.split(key, 4)
    bound1 = 1.0 / jnp.sqrt(in_ch)
    bound2 = 1.0 / jnp.sqrt(hid_ch)
    w1 = jax.random.uniform(k1, (in_ch, hid_ch), jnp.float32, -bound1, bound1)
    b1 = jax.random.uniform(k2, (hid_ch,), jnp.float32, -bound1, bound1)
    w2 = jax.random.uniform(k3, (hid_ch, out_ch), jnp.float32, -bound2, bound2)
    b2 = jax.random.uniform(k4, (out_ch,), jnp.float32, -bound2, bound2)
    return w1, b1, w2, b2


if __name__ == "__main__":
    key = jax.random.PRNGKey(0)
    kx, kp = jax.random.split(key)

    B, in_ch, hid_ch, out_ch = 8, 16, 32, 8
    x = jax.random.normal(kx, (B, in_ch), jnp.float32)
    w1, b1, w2, b2 = init_mlp_params(kp, in_ch, hid_ch, out_ch)

    # Pure-JAX reference (same math as torch: relu(x @ W1^T + b1) @ W2^T + b2).
    ref = jnp.maximum(x @ w1 + b1, 0.0) @ w2 + b2

    # Torch-exact path: f32 compute.
    p_f32 = prepare_mlp_params(w1, b1, w2, b2, compute_dtype=jnp.float32)
    out_f32 = jax.block_until_ready(mlp_forward(x, *p_f32, out_ch=out_ch))
    assert out_f32.shape == (B, out_ch)
    assert jnp.allclose(out_f32, ref, atol=1e-5, rtol=1e-5)

    # Performance path: bf16 MXU compute with f32 accumulation (results differ
    # from the f32 reference at ~1e-2 relative by construction).
    p_bf16 = prepare_mlp_params(w1, b1, w2, b2, compute_dtype=jnp.bfloat16)
    out_bf16 = jax.block_until_ready(mlp_forward(x, *p_bf16, out_ch=out_ch))
    assert out_bf16.shape == (B, out_ch)
    assert jnp.allclose(out_bf16, ref, atol=5e-2, rtol=5e-2)

    # Exercise the weight-streaming (hid-tiled) path on the same small problem.
    out_stream = jax.block_until_ready(
        mlp_forward(x, *p_f32, out_ch=out_ch, hid_tile=128, batch_tile=16))
    assert jnp.allclose(out_stream, ref, atol=1e-5, rtol=1e-5)

    print("KERNEL_OK")
</pallas_src>

<mosaic_0001>
module attributes {stable_mosaic.version = 11 : i64} {
  func.func @_mlp_kernel_resident(%arg0: i32, %arg1: memref<8x128xf32, #tpu.memory_space<vmem>>, %arg2: memref<128x128xf32, #tpu.memory_space<vmem>>, %arg3: memref<1x128xf32, #tpu.memory_space<vmem>>, %arg4: memref<128x128xf32, #tpu.memory_space<vmem>>, %arg5: memref<1x128xf32, #tpu.memory_space<vmem>>, %arg6: memref<8x128xf32, #tpu.memory_space<vmem>>) attributes {dimension_semantics = [#tpu.dimension_semantics<parallel>], iteration_bounds = array<i64: 1>, scalar_prefetch = 0 : i64, scratch_operands = 0 : i64, tpu.core_type = #tpu.core_type<tc>, window_params = [{transform_indices = @transform_0, window_bounds = array<i64: 8, 128>}, {pipeline_mode = #tpu.pipeline_mode<synchronous>, transform_indices = @transform_1, window_bounds = array<i64: 128, 128>}, {pipeline_mode = #tpu.pipeline_mode<synchronous>, transform_indices = @transform_2, window_bounds = array<i64: 1, 128>}, {pipeline_mode = #tpu.pipeline_mode<synchronous>, transform_indices = @transform_3, window_bounds = array<i64: 128, 128>}, {pipeline_mode = #tpu.pipeline_mode<synchronous>, transform_indices = @transform_4, window_bounds = array<i64: 1, 128>}, {transform_indices = @transform_5, window_bounds = array<i64: 8, 128>}]} {
    %c0 = arith.constant 0 : index
    %c0_0 = arith.constant 0 : index
    %0 = vector.load %arg1[%c0, %c0_0] : memref<8x128xf32, #tpu.memory_space<vmem>>, vector<8x128xf32>
    %c0_1 = arith.constant 0 : index
    %c0_2 = arith.constant 0 : index
    %1 = vector.load %arg2[%c0_1, %c0_2] : memref<128x128xf32, #tpu.memory_space<vmem>>, vector<128x128xf32>
    %cst = arith.constant dense<0.000000e+00> : vector<8x128xf32>
    %2 = tpu.matmul %0, %1, %cst {dimension_numbers = #tpu.dot_dimension_numbers<[1], [0], [0], [1], [0, 0, 1, 1], [], []>} : vector<8x128xf32>, vector<128x128xf32>, vector<8x128xf32> -> vector<8x128xf32>
    %c0_3 = arith.constant 0 : index
    %c0_4 = arith.constant 0 : index
    %3 = vector.load %arg3[%c0_3, %c0_4] : memref<1x128xf32, #tpu.memory_space<vmem>>, vector<1x128xf32>
    %4 = vector.broadcast %3 : vector<1x128xf32> to vector<8x128xf32>
    %5 = arith.addf %2, %4 : vector<8x128xf32>
    %cst_5 = arith.constant 0.000000e+00 : f32
    %6 = vector.broadcast %cst_5 : f32 to vector<8x128xf32>
    %7 = arith.maximumf %5, %6 : vector<8x128xf32>
    %c0_6 = arith.constant 0 : index
    %c0_7 = arith.constant 0 : index
    %8 = vector.load %arg4[%c0_6, %c0_7] : memref<128x128xf32, #tpu.memory_space<vmem>>, vector<128x128xf32>
    %cst_8 = arith.constant dense<0.000000e+00> : vector<8x128xf32>
    %9 = tpu.matmul %7, %8, %cst_8 {dimension_numbers = #tpu.dot_dimension_numbers<[1], [0], [0], [1], [0, 0, 1, 1], [], []>} : vector<8x128xf32>, vector<128x128xf32>, vector<8x128xf32> -> vector<8x128xf32>
    %c0_9 = arith.constant 0 : index
    %c0_10 = arith.constant 0 : index
    %10 = vector.load %arg5[%c0_9, %c0_10] : memref<1x128xf32, #tpu.memory_space<vmem>>, vector<1x128xf32>
    %11 = vector.broadcast %10 : vector<1x128xf32> to vector<8x128xf32>
    %12 = arith.addf %9, %11 : vector<8x128xf32>
    %c0_11 = arith.constant 0 : index
    %c0_12 = arith.constant 0 : index
    %13 = vector.load %arg6[%c0_11, %c0_12] : memref<8x128xf32, #tpu.memory_space<vmem>>, vector<8x128xf32>
    tpu.vector_store %arg6[%c0_11, %c0_12], %12 {strides = array<i32>} : memref<8x128xf32, #tpu.memory_space<vmem>>, vector<8x128xf32>,
    return
  }
  func.func @transform_0(%arg0: i32) -> (i32, i32) {
    %c0_i32 = arith.constant 0 : i32
    %c0_i32_0 = arith.constant 0 : i32
    return %arg0, %c0_i32 : i32, i32
  }
  func.func @transform_1(%arg0: i32) -> (i32, i32) {
    %c0_i32 = arith.constant 0 : i32
    %c0_i32_0 = arith.constant 0 : i32
    %c0_i32_1 = arith.constant 0 : i32
    return %c0_i32, %c0_i32_0 : i32, i32
  }
  func.func @transform_2(%arg0: i32) -> (i32, i32) {
    %c0_i32 = arith.constant 0 : i32
    %c0_i32_0 = arith.constant 0 : i32
    %c0_i32_1 = arith.constant 0 : i32
    return %c0_i32, %c0_i32_0 : i32, i32
  }
  func.func @transform_3(%arg0: i32) -> (i32, i32) {
    %c0_i32 = arith.constant 0 : i32
    %c0_i32_0 = arith.constant 0 : i32
    %c0_i32_1 = arith.constant 0 : i32
    return %c0_i32, %c0_i32_0 : i32, i32
  }
  func.func @transform_4(%arg0: i32) -> (i32, i32) {
    %c0_i32 = arith.constant 0 : i32
    %c0_i32_0 = arith.constant 0 : i32
    %c0_i32_1 = arith.constant 0 : i32
    return %c0_i32, %c0_i32_0 : i32, i32
  }
  func.func @transform_5(%arg0: i32) -> (i32, i32) {
    %c0_i32 = arith.constant 0 : i32
    %c0_i32_0 = arith.constant 0 : i32
    return %arg0, %c0_i32 : i32, i32
  }
}

</mosaic_0001>

<bundles_post_ra>
// kernel: mlp_forward.1
= control target key start
LH: loop header
LB: loop body
LE: loop exit
PB: predicated region body
PF: predicated region fallthrough
CT: control target
= control target key end

     0   :  { %10 = vsyncpa [#allocation3], 0  ;;  %s587_s0 = inlined_call_operand.vmem [shape: f32[8,128], index: 0, kind: input, shape index: {}]   ;;  %s588_s1 = inlined_call_operand.hbm [shape: f32[128,128], index: 1, kind: input, shape index: {}]   ;;  %s589_s2 = inlined_call_operand.vmem [shape: f32[1,128], index: 2, kind: input, shape index: {}]   ;;  %s590_s3 = inlined_call_operand.hbm [shape: f32[128,128], index: 3, kind: input, shape index: {}]   ;;  %s591_s4 = inlined_call_operand.vmem [shape: f32[1,128], index: 4, kind: input, shape index: {}]   ;;  %s592_s5 = inlined_call_operand.hbm [shape: f32[8,128], index: 5, kind: output, shape index: {}]  }
   0x1   :  { %11 = vsyncpa [#allocation6], 0 }
   0x2   :  { %12 = vsyncpa [#allocation4], 0  ;;  %s488_s18 = smov [#allocation2]   ;;  %s416_s22 = scalar_lea.hbm %s588_s1, 2048 }
   0x3   :  { %s20_s19 = sshll.u32 %s488_s18, 4  ;;  %p417_p0 = scmp.ne.s32.totalorder %s588_s1, %s416_s22  ;;  %s21_s19 = int_to_ptr.vmem [resolvable:$true] %s20_s19 }
   0x4   :  { %p420_p1 = scmp.lt.u32.totalorder %s416_s22, %s588_s1 }
   0x6   :  { %p422_p2 = pnand %p420_p1, %p417_p0 }
   0x8   :  { %425 = shalt.err (!%p422_p2)
}
   0x9   :  { %s426_s27 = scalar_lea.vmem %s21_s19, 2048  ;;  %p431_p4 = scmp.lt.s32.totalorder %s21_s19, %s21_s19 }
   0xa   :  { %p427_p3 = scmp.ne.s32.totalorder %s21_s19, %s426_s27  ;;  %p432_p5 = scmp.lt.s32.totalorder %s426_s27, %s426_s27 }
   0xc   :  { %p433_p6 = por %p432_p5, %p431_p4 }
   0xe   :  { %p434_p7 = pnand %p433_p6, %p427_p3 }
  0x10   :  { %437 = shalt.err (!%p434_p7)
}
  0x11   :  { %s489_s28 = smov 128   ;;  %s490_s29 = smov 8  }
  0x12   :  { %26 = dma.hbm_to_vmem [thread:$0]  %s588_s1, 2048, %s21_s19, [#allocation3], %s489_s28, %s489_s28, %s490_s29  }
  0x13   :  { %s491_s7 = smov [#allocation5]   ;;  %s438_s11 = scalar_lea.hbm %s590_s3, 2048 }
  0x14   :  { %s34_s8 = sshll.u32 %s491_s7, 4  ;;  %p439_p8 = scmp.ne.s32.totalorder %s590_s3, %s438_s11  ;;  %s35_s8 = int_to_ptr.vmem [resolvable:$true] %s34_s8 }
  0x15   :  { %p442_p9 = scmp.lt.u32.totalorder %s438_s11, %s590_s3 }
  0x17   :  { %p444_p10 = pnand %p442_p9, %p439_p8 }
  0x19   :  { %447 = shalt.err (!%p444_p10)
}
  0x1a   :  { %s448_s16 = scalar_lea.vmem %s35_s8, 2048  ;;  %p453_p12 = scmp.lt.s32.totalorder %s35_s8, %s35_s8 }
  0x1b   :  { %p449_p11 = scmp.ne.s32.totalorder %s35_s8, %s448_s16  ;;  %p454_p13 = scmp.lt.s32.totalorder %s448_s16, %s448_s16 }
  0x1d   :  { %p455_p0 = por %p454_p13, %p453_p12 }
  0x1f   :  { %p456_p1 = pnand %p455_p0, %p449_p11 }
  0x21   :  { %459 = shalt.err (!%p456_p1)
}
  0x22   :  { %40 = dma.hbm_to_vmem [thread:$0]  %s590_s3, 2048, %s35_s8, [#allocation6], %s489_s28, %s489_s28, %s490_s29  }
  0x23   :  { %482 = dma.done.wait [#allocation3], 2048  }
  0x24   :  { %483 = vsyncadd [#allocation3], 4294965248 }
  0x25   :  { %484 = dma.done.wait [#allocation6], 2048  }
  0x26   :  { %485 = vsyncadd [#allocation6], 4294965248  ;;  %v492_v0 = vmov 0.0|0.0   ;;  %vm493_vm0 = vmmov 0   ;;  %v494_v1 = vmov 0.0   ;;  %v50_v2 = vld [vmem:[#allocation2] sm:$0xff] }
  0x27   :  { %360 = vmatprep.subr.bf16.mxu0 %v492_v0  ;;  %322 = vmatprep.mubr.msk.f32.mxu0 %vm493_vm0, %v494_v1  ;;  %v51_v3 = vld [vmem:[#allocation2 + $0x8] sm:$0xff]  ;;  %v52_v4 = vld [vmem:[#allocation2 + $0x10] sm:$0xff]  ;;  %v53_v6 = vld [vmem:[#allocation2 + $0x18] sm:$0xff] }
  0x28   :  { %384 = vmatprep.subr.bf16.mxu1 %v492_v0  ;;  %357 = vmatprep.mubr.msk.f32.mxu1 %vm493_vm0, %v494_v1  ;;  %v361_v5 = vpack.c.bf16 %v51_v3, %v50_v2  ;;  %v364_v7 = vpack.c.bf16 %v53_v6, %v52_v4  ;;  %v54_v8 = vld [vmem:[#allocation2 + $0x20] sm:$0xff]  ;;  %v55_v9 = vld [vmem:[#allocation2 + $0x28] sm:$0xff]  ;;  %v146_v12 = vld [vmem:[#allocation5 + $0x10] sm:$0xff] }
  0x29   :  { %v144_v10 = vld [vmem:[#allocation5] sm:$0xff]  ;;  %v145_v11 = vld [vmem:[#allocation5 + $0x8] sm:$0xff]  ;;  %v147_v13 = vld [vmem:[#allocation5 + $0x18] sm:$0xff]  ;;  %v367_v14 = vpack.c.bf16 %v55_v9, %v54_v8 }
  0x2a   :  { %362 = vmatpush3.bf16.msra.mxu0 %v361_v5  ;;  %v385_v15 = vpack.c.bf16 %v145_v11, %v144_v10  ;;  %v56_v16 = vld [vmem:[#allocation2 + $0x30] sm:$0xff]  ;;  %v57_v17 = vld [vmem:[#allocation2 + $0x38] sm:$0xff]  ;;  %v388_v18 = vpack.c.bf16 %v147_v13, %v146_v12  ;;  %v148_v19 = vld [vmem:[#allocation5 + $0x20] sm:$0xff] }
  0x2b   :  { %363 = vmatprep.subr.bf16.mxu0 %v492_v0  ;;  %v149_v20 = vld [vmem:[#allocation5 + $0x28] sm:$0xff]  ;;  %v370_v21 = vpack.c.bf16 %v57_v17, %v56_v16  ;;  %v58_v22 = vld [vmem:[#allocation2 + $0x40] sm:$0xff]  ;;  %v150_v25 = vld [vmem:[#allocation5 + $0x30] sm:$0xff] }
  0x2c   :  { %386 = vmatpush3.bf16.msra.mxu1 %v385_v15  ;;  %v59_v23 = vld [vmem:[#allocation2 + $0x48] sm:$0xff]  ;;  %v391_v24 = vpack.c.bf16 %v149_v20, %v148_v19  ;;  %v151_v26 = vld [vmem:[#allocation5 + $0x38] sm:$0xff]  ;;  %v60_v28 = vld [vmem:[#allocation2 + $0x50] sm:$0xff] }
  0x2d   :  { %387 = vmatprep.subr.bf16.mxu1 %v492_v0  ;;  %v373_v27 = vpack.c.bf16 %v59_v23, %v58_v22  ;;  %v61_v29 = vld [vmem:[#allocation2 + $0x58] sm:$0xff]  ;;  %v394_v30 = vpack.c.bf16 %v151_v26, %v150_v25  ;;  %v152_v31 = vld [vmem:[#allocation5 + $0x40] sm:$0xff]  ;;  %v153_v32 = vld [vmem:[#allocation5 + $0x48] sm:$0xff] }
  0x2e   :  { %365 = vmatpush3.bf16.msra.mxu0 %v364_v7  ;;  %v376_v33 = vpack.c.bf16 %v61_v29, %v60_v28  ;;  %v62_v34 = vld [vmem:[#allocation2 + $0x60] sm:$0xff]  ;;  %v63_v35 = vld [vmem:[#allocation2 + $0x68] sm:$0xff]  ;;  %v397_v36 = vpack.c.bf16 %v153_v32, %v152_v31  ;;  %v154_v37 = vld [vmem:[#allocation5 + $0x50] sm:$0xff] }
  0x2f   :  { %366 = vmatprep.subr.bf16.mxu0 %v492_v0  ;;  %v155_v38 = vld [vmem:[#allocation5 + $0x58] sm:$0xff]  ;;  %v379_v39 = vpack.c.bf16 %v63_v35, %v62_v34  ;;  %v64_v40 = vld [vmem:[#allocation2 + $0x70] sm:$0xff]  ;;  %v156_v43 = vld [vmem:[#allocation5 + $0x60] sm:$0xff] }
  0x30   :  { %389 = vmatpush3.bf16.msra.mxu1 %v388_v18  ;;  %v65_v41 = vld [vmem:[#allocation2 + $0x78] sm:$0xff]  ;;  %v400_v42 = vpack.c.bf16 %v155_v38, %v154_v37  ;;  %v157_v44 = vld [vmem:[#allocation5 + $0x68] sm:$0xff]  ;;  %v158_v48 = vld [vmem:[#allocation5 + $0x70] sm:$0xff] }
  0x31   :  { %390 = vmatprep.subr.bf16.mxu1 %v492_v0  ;;  %v382_v45 = vpack.c.bf16 %v65_v41, %v64_v40  ;;  %v403_v46 = vpack.c.bf16 %v157_v44, %v156_v43  ;;  %v49_v47 = vld [vmem:[%s587_s0] sm:$0xff]  ;;  %s495_s0 = smov [#allocation7]  }
  0x32   :  { %368 = vmatpush3.bf16.msra.mxu0 %v367_v14  ;;  %v159_v49 = vld [vmem:[#allocation5 + $0x78] sm:$0xff]  ;;  %s244_s23 = sshll.u32 %s495_s0, 4  ;;  %s245_s23 = int_to_ptr.vmem [resolvable:$true] %s244_s23 }
  0x33   :  { %369 = vmatprep.subr.bf16.mxu0 %v492_v0  ;;  %v406_v50 = vpack.c.bf16 %v159_v49, %v158_v48  ;;  %v254_v51 = vld [vmem:[%s589_s2] ss:$0 sm:$0xff]  ;;  %s460_s24 = scalar_lea.vmem %s245_s23, 128  ;;  %p465_p3 = scmp.lt.s32.totalorder %s245_s23, %s245_s23 }
  0x34   :  { %392 = vmatpush3.bf16.msra.mxu1 %v391_v24  ;;  %v255_v56 = vld [vmem:[%s591_s4] ss:$0 sm:$0xff]  ;;  %p461_p2 = scmp.ne.s32.totalorder %s245_s23, %s460_s24  ;;  %p466_p4 = scmp.lt.s32.totalorder %s460_s24, %s460_s24 }
  0x35   :  { %393 = vmatprep.subr.bf16.mxu1 %v492_v0 }
  0x36   :  { %371 = vmatpush3.bf16.msra.mxu0 %v370_v21  ;;  %p467_p5 = por %p466_p4, %p465_p3 }
  0x37   :  { %372 = vmatprep.subr.bf16.mxu0 %v492_v0 }
  0x38   :  { %395 = vmatpush3.bf16.msra.mxu1 %v394_v30  ;;  %p468_p6 = pnand %p467_p5, %p461_p2 }
  0x39   :  { %396 = vmatprep.subr.bf16.mxu1 %v492_v0 }
  0x3a   :  { %374 = vmatpush3.bf16.msra.mxu0 %v373_v27 }
  0x3b   :  { %375 = vmatprep.subr.bf16.mxu0 %v492_v0 }
  0x3c   :  { %398 = vmatpush3.bf16.msra.mxu1 %v397_v36 }
  0x3d   :  { %399 = vmatprep.subr.bf16.mxu1 %v492_v0 }
  0x3e   :  { %377 = vmatpush3.bf16.msra.mxu0 %v376_v33 }
  0x3f   :  { %378 = vmatprep.subr.bf16.mxu0 %v492_v0 }
  0x40   :  { %401 = vmatpush3.bf16.msra.mxu1 %v400_v42 }
  0x41   :  { %402 = vmatprep.subr.bf16.mxu1 %v492_v0 }
  0x42   :  { %380 = vmatpush3.bf16.msra.mxu0 %v379_v39 }
  0x43   :  { %381 = vmatprep.subr.bf16.mxu0 %v492_v0 }
  0x44   :  { %404 = vmatpush3.bf16.msra.mxu1 %v403_v46 }
  0x45   :  { %405 = vmatprep.subr.bf16.mxu1 %v492_v0 }
  0x46   :  { %383 = vmatpush3.bf16.msra.mxu0 %v382_v45 }
  0x48   :  { %407 = vmatpush3.bf16.msra.mxu1 %v406_v50 }
  0x49   :  { %323 = vmatmul.mubr.f32.vlgmr.msra.gmra.mrb[0].mxu0 %v49_v47 }
 0x11c   :  { %v139_v52 = vpop.f32.mrb[0].mxu0 }
 0x11d   :  { %v140_v53 = vadd.f32 %v254_v51, %v139_v52  ;;  %v324_v54 = vpop.f32.mrb[1].mxu0 }
 0x11f   :  { %v143_v55 = vmax.f32 %v140_v53, 0.0 }
 0x121   :  { %358 = vmatmul.mubr.f32.vlgmr.msra.gmra.mrb[0].mxu1 %v143_v55 }
 0x1f4   :  { %v233_v57 = vpop.f32.mrb[0].mxu1 }
 0x1f5   :  { %v234_v58 = vadd.f32 %v255_v56, %v233_v57  ;;  %v359_v59 = vpop.f32.mrb[1].mxu1 }
 0x1f7   :  { %237 = vst [vmem:[#allocation7] sm:$0xff] %v234_v58 }
 0x1f8   :  { %471 = shalt.err (!%p468_p6)
}
 0x1f9   :  { %s472_s26 = scalar_lea.hbm %s592_s5, 128 }
 0x1fa   :  { %p473_p7 = scmp.ne.s32.totalorder %s592_s5, %s472_s26  ;;  %p476_p8 = scmp.lt.u32.totalorder %s472_s26, %s592_s5 }
 0x1fc   :  { %p478_p9 = pnand %p476_p8, %p473_p7 }
 0x1fe   :  { %481 = shalt.err (!%p478_p9)
}
 0x1ff   :  { %247 = dma.vmem_to_hbm [thread:$0]  %s245_s23, 128, %s592_s5, [#allocation4]  }
 0x200   :  { %486 = dma.done.wait [#allocation4], 128  }
 0x201   :  { %487 = vsyncadd [#allocation4], 4294967168 }
 0x202   :  { %251 = vsyncpa [#allocation3], 1 }
 0x203   :  { %252 = vsyncpa [#allocation6], 1 }
 0x204   :  { %253 = vsyncpa [#allocation4], 1 }

</bundles_post_ra>
